<compile_context>
chip_gen: v6e
topology: v6e:2x2x1
jax: 0.10.0
libtpu: 0.0.40
codegen_flags: <defaults>
</compile_context>

<pallas_src>
import functools

import jax
import jax.numpy as jnp
from jax import lax
from jax.experimental import pallas as pl
from jax.experimental.pallas import tpu as pltpu


def _basic_block_kernel(x_ref, w1_ref, b1_ref, w2_ref, b2_ref, m_ref, o_ref,
                        xbuf, midbuf, *, H, W, pad):
    """Fused conv3x3+BN+ReLU -> conv3x3+BN+add+ReLU for one image (C, H*W)."""
    HW = H * W

    # Zero the halo buffers every step (cheap; safe under megacore partitioning
    # where this core may never see program_id == 0), then write the interior.
    xbuf[...] = jnp.zeros_like(xbuf)
    midbuf[...] = jnp.zeros_like(midbuf)
    xbuf[:, pad:pad + HW] = x_ref[...]          # aligned, lane-dense store

    masks = m_ref[...]                          # (2, HW)
    left = masks[0:1, :]                        # 0 where col == 0
    right = masks[1:2, :]                       # 0 where col == W - 1

    def conv9(src, w):
        # src: (C, pad + HW + pad) zero-padded flat image, w: (9, Cout, Cin)
        acc = jnp.zeros((w.shape[1], HW), jnp.float32)
        for dy in range(3):
            for dx in range(3):
                off = (dy - 1) * W + (dx - 1)
                tap = src[:, pad + off: pad + off + HW]   # (Cin, HW)
                if dx == 0:
                    tap = tap * left          # kill row-wrap reads at x == 0
                elif dx == 2:
                    tap = tap * right         # kill row-wrap reads at x == W-1
                acc = acc + jnp.dot(w[dy * 3 + dx], tap,
                                    preferred_element_type=jnp.float32)
        return acc

    # Stage 1: conv1 (scale-folded) + shift + ReLU, kept in VMEM with halo.
    mid = jnp.maximum(conv9(xbuf[...], w1_ref[...]) + b1_ref[...], 0.0)
    midbuf[:, pad:pad + HW] = mid

    # Stage 2: conv2 (scale-folded) + shift + residual + ReLU.
    acc2 = conv9(midbuf[...], w2_ref[...])
    out = jnp.maximum(acc2 + b2_ref[...] + x_ref[...].astype(jnp.float32), 0.0)
    o_ref[...] = out.astype(o_ref.dtype)


def basic_block_forward(x_nchw, params, eps=1e-5):
    """BasicBlock forward. x_nchw: (N, C, H, W) float32 -> (N, C, H, W)."""
    w1, g1, be1, m1, v1, w2, g2, be2, m2, v2 = params   # conv weights in HWIO
    N, C, H, W = x_nchw.shape
    Cout = w1.shape[-1]
    assert C == Cout, "stride=1 / downsample=None requires inplanes == planes"
    HW = H * W

    # Fold eval-mode BN: scale into the conv weights, keep only the shift.
    s1 = g1 / jnp.sqrt(v1 + eps)
    b1 = be1 - m1 * s1
    s2 = g2 / jnp.sqrt(v2 + eps)
    b2 = be2 - m2 * s2

    # (3,3,Cin,Cout) -> (9, Cout, Cin), scaled over output channels.
    w1_k = jnp.transpose(w1.reshape(9, C, Cout), (0, 2, 1)) * s1[None, :, None]
    w2_k = jnp.transpose(w2.reshape(9, Cout, Cout), (0, 2, 1)) * s2[None, :, None]

    # Column masks for the dx = -1 / +1 taps (block reads that wrap rows).
    col = jnp.arange(HW, dtype=jnp.int32) % W
    masks = jnp.stack([
        jnp.where(col != 0, 1.0, 0.0),
        jnp.where(col != W - 1, 1.0, 0.0),
    ]).astype(jnp.float32)                                # (2, HW)

    x_flat = x_nchw.reshape(N, C, HW)                     # free reshape, NCHW

    pad = ((W + 1 + 127) // 128) * 128                    # lane-aligned halo
    padw = pad + HW + pad

    kernel = functools.partial(_basic_block_kernel, H=H, W=W, pad=pad)
    out_flat = pl.pallas_call(
        kernel,
        out_shape=jax.ShapeDtypeStruct((N, Cout, HW), jnp.float32),
        grid_spec=pltpu.PrefetchScalarGridSpec(
            num_scalar_prefetch=0,
            grid=(N,),
            in_specs=[
                pl.BlockSpec((None, C, HW), lambda n: (n, 0, 0)),
                pl.BlockSpec((9, Cout, C), lambda n: (0, 0, 0)),
                pl.BlockSpec((Cout, 1), lambda n: (0, 0)),
                pl.BlockSpec((9, Cout, Cout), lambda n: (0, 0, 0)),
                pl.BlockSpec((Cout, 1), lambda n: (0, 0)),
                pl.BlockSpec((2, HW), lambda n: (0, 0)),
            ],
            out_specs=pl.BlockSpec((None, Cout, HW), lambda n: (n, 0, 0)),
            scratch_shapes=[
                pltpu.VMEM((C, padw), jnp.float32),       # padded input
                pltpu.VMEM((Cout, padw), jnp.float32),    # padded intermediate
            ],
        ),
        compiler_params=pltpu.CompilerParams(
            dimension_semantics=("parallel",)),
    )(x_flat, w1_k, b1.reshape(Cout, 1), w2_k, b2.reshape(Cout, 1), masks)

    return out_flat.reshape(N, Cout, H, W)


def _reference_forward(x_nchw, params, eps=1e-5):
    """Pure-JAX reference (lax.conv) mirroring the PyTorch module in eval mode."""
    w1, g1, be1, m1, v1, w2, g2, be2, m2, v2 = params
    x = jnp.transpose(x_nchw, (0, 2, 3, 1))

    def conv(inp, w):
        return lax.conv_general_dilated(
            inp, w, window_strides=(1, 1), padding="SAME",
            dimension_numbers=("NHWC", "HWIO", "NHWC"))

    def bn(inp, g, be, m, v):
        return (inp - m) / jnp.sqrt(v + eps) * g + be

    out = jax.nn.relu(bn(conv(x, w1), g1, be1, m1, v1))
    out = bn(conv(out, w2), g2, be2, m2, v2) + x
    out = jax.nn.relu(out)
    return jnp.transpose(out, (0, 3, 1, 2))


def _init_params(key, inplanes, planes):
    ks = jax.random.split(key, 10)
    w1 = 0.1 * jax.random.normal(ks[0], (3, 3, inplanes, planes), jnp.float32)
    w2 = 0.1 * jax.random.normal(ks[1], (3, 3, planes, planes), jnp.float32)
    g1 = jax.random.uniform(ks[2], (planes,), jnp.float32, 0.5, 1.5)
    be1 = 0.1 * jax.random.normal(ks[3], (planes,), jnp.float32)
    m1 = 0.1 * jax.random.normal(ks[4], (planes,), jnp.float32)
    v1 = jax.random.uniform(ks[5], (planes,), jnp.float32, 0.5, 1.5)
    g2 = jax.random.uniform(ks[6], (planes,), jnp.float32, 0.5, 1.5)
    be2 = 0.1 * jax.random.normal(ks[7], (planes,), jnp.float32)
    m2 = 0.1 * jax.random.normal(ks[8], (planes,), jnp.float32)
    v2 = jax.random.uniform(ks[9], (planes,), jnp.float32, 0.5, 1.5)
    return (w1, g1, be1, m1, v1, w2, g2, be2, m2, v2)


if __name__ == "__main__":
    key = jax.random.PRNGKey(0)
    k_x, k_p = jax.random.split(key)

    N, C, H, W = 2, 4, 16, 16          # inplanes = planes = 4, stride = 1
    x = jax.random.normal(k_x, (N, C, H, W), jnp.float32)
    params = _init_params(k_p, C, C)

    out = jax.block_until_ready(basic_block_forward(x, params))
    ref = jax.block_until_ready(_reference_forward(x, params))

    assert out.shape == (N, C, H, W)
    assert jnp.allclose(out, ref, atol=1e-4, rtol=1e-4), "mismatch vs reference"

    print("KERNEL_OK")
</pallas_src>

<mosaic_0001>
module attributes {stable_mosaic.version = 11 : i64} {
  func.func @_basic_block_kernel(%arg0: i32, %arg1: memref<1x4x256xf32, #tpu.memory_space<vmem>>, %arg2: memref<9x4x4xf32, #tpu.memory_space<vmem>>, %arg3: memref<4x1xf32, #tpu.memory_space<vmem>>, %arg4: memref<9x4x4xf32, #tpu.memory_space<vmem>>, %arg5: memref<4x1xf32, #tpu.memory_space<vmem>>, %arg6: memref<2x256xf32, #tpu.memory_space<vmem>>, %arg7: memref<1x4x256xf32, #tpu.memory_space<vmem>>, %arg8: memref<4x512xf32, #tpu.memory_space<vmem>>, %arg9: memref<4x512xf32, #tpu.memory_space<vmem>>) attributes {dimension_semantics = [#tpu.dimension_semantics<parallel>], iteration_bounds = array<i64: 2>, scalar_prefetch = 0 : i64, scratch_operands = 2 : i64, tpu.core_type = #tpu.core_type<tc>, window_params = [{transform_indices = @transform_0, window_bounds = array<i64: 1, 4, 256>}, {pipeline_mode = #tpu.pipeline_mode<synchronous>, transform_indices = @transform_1, window_bounds = array<i64: 9, 4, 4>}, {pipeline_mode = #tpu.pipeline_mode<synchronous>, transform_indices = @transform_2, window_bounds = array<i64: 4, 1>}, {pipeline_mode = #tpu.pipeline_mode<synchronous>, transform_indices = @transform_3, window_bounds = array<i64: 9, 4, 4>}, {pipeline_mode = #tpu.pipeline_mode<synchronous>, transform_indices = @transform_4, window_bounds = array<i64: 4, 1>}, {pipeline_mode = #tpu.pipeline_mode<synchronous>, transform_indices = @transform_5, window_bounds = array<i64: 2, 256>}, {transform_indices = @transform_6, window_bounds = array<i64: 1, 4, 256>}]} {
    %cst = arith.constant 0.000000e+00 : f32
    %0 = vector.broadcast %cst : f32 to vector<4x512xf32>
    %c0 = arith.constant 0 : index
    %c0_0 = arith.constant 0 : index
    %1 = vector.load %arg8[%c0, %c0_0] : memref<4x512xf32, #tpu.memory_space<vmem>>, vector<4x512xf32>
    tpu.vector_store %arg8[%c0, %c0_0], %0 {strides = array<i32>} : memref<4x512xf32, #tpu.memory_space<vmem>>, vector<4x512xf32>,
    %cst_1 = arith.constant 0.000000e+00 : f32
    %2 = vector.broadcast %cst_1 : f32 to vector<4x512xf32>
    %c0_2 = arith.constant 0 : index
    %c0_3 = arith.constant 0 : index
    %3 = vector.load %arg9[%c0_2, %c0_3] : memref<4x512xf32, #tpu.memory_space<vmem>>, vector<4x512xf32>
    tpu.vector_store %arg9[%c0_2, %c0_3], %2 {strides = array<i32>} : memref<4x512xf32, #tpu.memory_space<vmem>>, vector<4x512xf32>,
    %c0_4 = arith.constant 0 : index
    %c0_5 = arith.constant 0 : index
    %c0_6 = arith.constant 0 : index
    %4 = vector.load %arg1[%c0_4, %c0_5, %c0_6] : memref<1x4x256xf32, #tpu.memory_space<vmem>>, vector<1x4x256xf32>
    %5 = vector.shape_cast %4 : vector<1x4x256xf32> to vector<4x256xf32>
    %c0_7 = arith.constant 0 : index
    %c128 = arith.constant 128 : index
    %6 = vector.load %arg8[%c0_7, %c128] : memref<4x512xf32, #tpu.memory_space<vmem>>, vector<4x256xf32>
    tpu.vector_store %arg8[%c0_7, %c128], %5 {strides = array<i32>} : memref<4x512xf32, #tpu.memory_space<vmem>>, vector<4x256xf32>,
    %c0_8 = arith.constant 0 : index
    %c0_9 = arith.constant 0 : index
    %7 = vector.load %arg6[%c0_8, %c0_9] : memref<2x256xf32, #tpu.memory_space<vmem>>, vector<2x256xf32>
    %8 = vector.extract_strided_slice %7 {offsets = [0, 0], sizes = [1, 256], strides = [1, 1]} : vector<2x256xf32> to vector<1x256xf32>
    %9 = vector.extract_strided_slice %7 {offsets = [1, 0], sizes = [1, 256], strides = [1, 1]} : vector<2x256xf32> to vector<1x256xf32>
    %c0_10 = arith.constant 0 : index
    %c0_11 = arith.constant 0 : index
    %10 = vector.load %arg8[%c0_10, %c0_11] : memref<4x512xf32, #tpu.memory_space<vmem>>, vector<4x512xf32>
    %c0_12 = arith.constant 0 : index
    %c0_13 = arith.constant 0 : index
    %c0_14 = arith.constant 0 : index
    %11 = vector.load %arg2[%c0_12, %c0_13, %c0_14] : memref<9x4x4xf32, #tpu.memory_space<vmem>>, vector<9x4x4xf32>
    %cst_15 = arith.constant 0.000000e+00 : f32
    %12 = vector.broadcast %cst_15 : f32 to vector<4x256xf32>
    %13 = vector.extract_strided_slice %10 {offsets = [0, 111], sizes = [4, 256], strides = [1, 1]} : vector<4x512xf32> to vector<4x256xf32>
    %14 = vector.broadcast %8 : vector<1x256xf32> to vector<4x256xf32>
    %15 = arith.mulf %13, %14 : vector<4x256xf32>
    %16 = vector.extract_strided_slice %11 {offsets = [0, 0, 0], sizes = [1, 4, 4], strides = [1, 1, 1]} : vector<9x4x4xf32> to vector<1x4x4xf32>
    %17 = vector.shape_cast %16 : vector<1x4x4xf32> to vector<4x4xf32>
    %cst_16 = arith.constant dense<0.000000e+00> : vector<4x256xf32>
    %18 = tpu.matmul %17, %15, %cst_16 {dimension_numbers = #tpu.dot_dimension_numbers<[1], [0], [0], [1], [0, 0, 1, 1], [], []>} : vector<4x4xf32>, vector<4x256xf32>, vector<4x256xf32> -> vector<4x256xf32>
    %19 = arith.addf %12, %18 : vector<4x256xf32>
    %20 = vector.extract_strided_slice %10 {offsets = [0, 112], sizes = [4, 256], strides = [1, 1]} : vector<4x512xf32> to vector<4x256xf32>
    %21 = vector.extract_strided_slice %11 {offsets = [1, 0, 0], sizes = [1, 4, 4], strides = [1, 1, 1]} : vector<9x4x4xf32> to vector<1x4x4xf32>
    %22 = vector.shape_cast %21 : vector<1x4x4xf32> to vector<4x4xf32>
    %cst_17 = arith.constant dense<0.000000e+00> : vector<4x256xf32>
    %23 = tpu.matmul %22, %20, %cst_17 {dimension_numbers = #tpu.dot_dimension_numbers<[1], [0], [0], [1], [0, 0, 1, 1], [], []>} : vector<4x4xf32>, vector<4x256xf32>, vector<4x256xf32> -> vector<4x256xf32>
    %24 = arith.addf %19, %23 : vector<4x256xf32>
    %25 = vector.extract_strided_slice %10 {offsets = [0, 113], sizes = [4, 256], strides = [1, 1]} : vector<4x512xf32> to vector<4x256xf32>
    %26 = vector.broadcast %9 : vector<1x256xf32> to vector<4x256xf32>
    %27 = arith.mulf %25, %26 : vector<4x256xf32>
    %28 = vector.extract_strided_slice %11 {offsets = [2, 0, 0], sizes = [1, 4, 4], strides = [1, 1, 1]} : vector<9x4x4xf32> to vector<1x4x4xf32>
    %29 = vector.shape_cast %28 : vector<1x4x4xf32> to vector<4x4xf32>
    %cst_18 = arith.constant dense<0.000000e+00> : vector<4x256xf32>
    %30 = tpu.matmul %29, %27, %cst_18 {dimension_numbers = #tpu.dot_dimension_numbers<[1], [0], [0], [1], [0, 0, 1, 1], [], []>} : vector<4x4xf32>, vector<4x256xf32>, vector<4x256xf32> -> vector<4x256xf32>
    %31 = arith.addf %24, %30 : vector<4x256xf32>
    %32 = vector.extract_strided_slice %10 {offsets = [0, 127], sizes = [4, 256], strides = [1, 1]} : vector<4x512xf32> to vector<4x256xf32>
    %33 = vector.broadcast %8 : vector<1x256xf32> to vector<4x256xf32>
    %34 = arith.mulf %32, %33 : vector<4x256xf32>
    %35 = vector.extract_strided_slice %11 {offsets = [3, 0, 0], sizes = [1, 4, 4], strides = [1, 1, 1]} : vector<9x4x4xf32> to vector<1x4x4xf32>
    %36 = vector.shape_cast %35 : vector<1x4x4xf32> to vector<4x4xf32>
    %cst_19 = arith.constant dense<0.000000e+00> : vector<4x256xf32>
    %37 = tpu.matmul %36, %34, %cst_19 {dimension_numbers = #tpu.dot_dimension_numbers<[1], [0], [0], [1], [0, 0, 1, 1], [], []>} : vector<4x4xf32>, vector<4x256xf32>, vector<4x256xf32> -> vector<4x256xf32>
    %38 = arith.addf %31, %37 : vector<4x256xf32>
    %39 = vector.extract_strided_slice %10 {offsets = [0, 128], sizes = [4, 256], strides = [1, 1]} : vector<4x512xf32> to vector<4x256xf32>
    %40 = vector.extract_strided_slice %11 {offsets = [4, 0, 0], sizes = [1, 4, 4], strides = [1, 1, 1]} : vector<9x4x4xf32> to vector<1x4x4xf32>
    %41 = vector.shape_cast %40 : vector<1x4x4xf32> to vector<4x4xf32>
    %cst_20 = arith.constant dense<0.000000e+00> : vector<4x256xf32>
    %42 = tpu.matmul %41, %39, %cst_20 {dimension_numbers = #tpu.dot_dimension_numbers<[1], [0], [0], [1], [0, 0, 1, 1], [], []>} : vector<4x4xf32>, vector<4x256xf32>, vector<4x256xf32> -> vector<4x256xf32>
    %43 = arith.addf %38, %42 : vector<4x256xf32>
    %44 = vector.extract_strided_slice %10 {offsets = [0, 129], sizes = [4, 256], strides = [1, 1]} : vector<4x512xf32> to vector<4x256xf32>
    %45 = vector.broadcast %9 : vector<1x256xf32> to vector<4x256xf32>
    %46 = arith.mulf %44, %45 : vector<4x256xf32>
    %47 = vector.extract_strided_slice %11 {offsets = [5, 0, 0], sizes = [1, 4, 4], strides = [1, 1, 1]} : vector<9x4x4xf32> to vector<1x4x4xf32>
    %48 = vector.shape_cast %47 : vector<1x4x4xf32> to vector<4x4xf32>
    %cst_21 = arith.constant dense<0.000000e+00> : vector<4x256xf32>
    %49 = tpu.matmul %48, %46, %cst_21 {dimension_numbers = #tpu.dot_dimension_numbers<[1], [0], [0], [1], [0, 0, 1, 1], [], []>} : vector<4x4xf32>, vector<4x256xf32>, vector<4x256xf32> -> vector<4x256xf32>
    %50 = arith.addf %43, %49 : vector<4x256xf32>
    %51 = vector.extract_strided_slice %10 {offsets = [0, 143], sizes = [4, 256], strides = [1, 1]} : vector<4x512xf32> to vector<4x256xf32>
    %52 = vector.broadcast %8 : vector<1x256xf32> to vector<4x256xf32>
    %53 = arith.mulf %51, %52 : vector<4x256xf32>
    %54 = vector.extract_strided_slice %11 {offsets = [6, 0, 0], sizes = [1, 4, 4], strides = [1, 1, 1]} : vector<9x4x4xf32> to vector<1x4x4xf32>
    %55 = vector.shape_cast %54 : vector<1x4x4xf32> to vector<4x4xf32>
    %cst_22 = arith.constant dense<0.000000e+00> : vector<4x256xf32>
    %56 = tpu.matmul %55, %53, %cst_22 {dimension_numbers = #tpu.dot_dimension_numbers<[1], [0], [0], [1], [0, 0, 1, 1], [], []>} : vector<4x4xf32>, vector<4x256xf32>, vector<4x256xf32> -> vector<4x256xf32>
    %57 = arith.addf %50, %56 : vector<4x256xf32>
    %58 = vector.extract_strided_slice %10 {offsets = [0, 144], sizes = [4, 256], strides = [1, 1]} : vector<4x512xf32> to vector<4x256xf32>
    %59 = vector.extract_strided_slice %11 {offsets = [7, 0, 0], sizes = [1, 4, 4], strides = [1, 1, 1]} : vector<9x4x4xf32> to vector<1x4x4xf32>
    %60 = vector.shape_cast %59 : vector<1x4x4xf32> to vector<4x4xf32>
    %cst_23 = arith.constant dense<0.000000e+00> : vector<4x256xf32>
    %61 = tpu.matmul %60, %58, %cst_23 {dimension_numbers = #tpu.dot_dimension_numbers<[1], [0], [0], [1], [0, 0, 1, 1], [], []>} : vector<4x4xf32>, vector<4x256xf32>, vector<4x256xf32> -> vector<4x256xf32>
    %62 = arith.addf %57, %61 : vector<4x256xf32>
    %63 = vector.extract_strided_slice %10 {offsets = [0, 145], sizes = [4, 256], strides = [1, 1]} : vector<4x512xf32> to vector<4x256xf32>
    %64 = vector.broadcast %9 : vector<1x256xf32> to vector<4x256xf32>
    %65 = arith.mulf %63, %64 : vector<4x256xf32>
    %66 = vector.extract_strided_slice %11 {offsets = [8, 0, 0], sizes = [1, 4, 4], strides = [1, 1, 1]} : vector<9x4x4xf32> to vector<1x4x4xf32>
    %67 = vector.shape_cast %66 : vector<1x4x4xf32> to vector<4x4xf32>
    %cst_24 = arith.constant dense<0.000000e+00> : vector<4x256xf32>
    %68 = tpu.matmul %67, %65, %cst_24 {dimension_numbers = #tpu.dot_dimension_numbers<[1], [0], [0], [1], [0, 0, 1, 1], [], []>} : vector<4x4xf32>, vector<4x256xf32>, vector<4x256xf32> -> vector<4x256xf32>
    %69 = arith.addf %62, %68 : vector<4x256xf32>
    %c0_25 = arith.constant 0 : index
    %c0_26 = arith.constant 0 : index
    %70 = vector.load %arg3[%c0_25, %c0_26] : memref<4x1xf32, #tpu.memory_space<vmem>>, vector<4x1xf32>
    %71 = vector.broadcast %70 : vector<4x1xf32> to vector<4x256xf32>
    %72 = arith.addf %69, %71 : vector<4x256xf32>
    %cst_27 = arith.constant 0.000000e+00 : f32
    %73 = vector.broadcast %cst_27 : f32 to vector<4x256xf32>
    %74 = arith.maximumf %72, %73 : vector<4x256xf32>
    %c0_28 = arith.constant 0 : index
    %c128_29 = arith.constant 128 : index
    %75 = vector.load %arg9[%c0_28, %c128_29] : memref<4x512xf32, #tpu.memory_space<vmem>>, vector<4x256xf32>
    tpu.vector_store %arg9[%c0_28, %c128_29], %74 {strides = array<i32>} : memref<4x512xf32, #tpu.memory_space<vmem>>, vector<4x256xf32>,
    %c0_30 = arith.constant 0 : index
    %c0_31 = arith.constant 0 : index
    %76 = vector.load %arg9[%c0_30, %c0_31] : memref<4x512xf32, #tpu.memory_space<vmem>>, vector<4x512xf32>
    %c0_32 = arith.constant 0 : index
    %c0_33 = arith.constant 0 : index
    %c0_34 = arith.constant 0 : index
    %77 = vector.load %arg4[%c0_32, %c0_33, %c0_34] : memref<9x4x4xf32, #tpu.memory_space<vmem>>, vector<9x4x4xf32>
    %cst_35 = arith.constant 0.000000e+00 : f32
    %78 = vector.broadcast %cst_35 : f32 to vector<4x256xf32>
    %79 = vector.extract_strided_slice %76 {offsets = [0, 111], sizes = [4, 256], strides = [1, 1]} : vector<4x512xf32> to vector<4x256xf32>
    %80 = vector.broadcast %8 : vector<1x256xf32> to vector<4x256xf32>
    %81 = arith.mulf %79, %80 : vector<4x256xf32>
    %82 = vector.extract_strided_slice %77 {offsets = [0, 0, 0], sizes = [1, 4, 4], strides = [1, 1, 1]} : vector<9x4x4xf32> to vector<1x4x4xf32>
    %83 = vector.shape_cast %82 : vector<1x4x4xf32> to vector<4x4xf32>
    %cst_36 = arith.constant dense<0.000000e+00> : vector<4x256xf32>
    %84 = tpu.matmul %83, %81, %cst_36 {dimension_numbers = #tpu.dot_dimension_numbers<[1], [0], [0], [1], [0, 0, 1, 1], [], []>} : vector<4x4xf32>, vector<4x256xf32>, vector<4x256xf32> -> vector<4x256xf32>
    %85 = arith.addf %78, %84 : vector<4x256xf32>
    %86 = vector.extract_strided_slice %76 {offsets = [0, 112], sizes = [4, 256], strides = [1, 1]} : vector<4x512xf32> to vector<4x256xf32>
    %87 = vector.extract_strided_slice %77 {offsets = [1, 0, 0], sizes = [1, 4, 4], strides = [1, 1, 1]} : vector<9x4x4xf32> to vector<1x4x4xf32>
    %88 = vector.shape_cast %87 : vector<1x4x4xf32> to vector<4x4xf32>
    %cst_37 = arith.constant dense<0.000000e+00> : vector<4x256xf32>
    %89 = tpu.matmul %88, %86, %cst_37 {dimension_numbers = #tpu.dot_dimension_numbers<[1], [0], [0], [1], [0, 0, 1, 1], [], []>} : vector<4x4xf32>, vector<4x256xf32>, vector<4x256xf32> -> vector<4x256xf32>
    %90 = arith.addf %85, %89 : vector<4x256xf32>
    %91 = vector.extract_strided_slice %76 {offsets = [0, 113], sizes = [4, 256], strides = [1, 1]} : vector<4x512xf32> to vector<4x256xf32>
    %92 = vector.broadcast %9 : vector<1x256xf32> to vector<4x256xf32>
    %93 = arith.mulf %91, %92 : vector<4x256xf32>
    %94 = vector.extract_strided_slice %77 {offsets = [2, 0, 0], sizes = [1, 4, 4], strides = [1, 1, 1]} : vector<9x4x4xf32> to vector<1x4x4xf32>
    %95 = vector.shape_cast %94 : vector<1x4x4xf32> to vector<4x4xf32>
    %cst_38 = arith.constant dense<0.000000e+00> : vector<4x256xf32>
    %96 = tpu.matmul %95, %93, %cst_38 {dimension_numbers = #tpu.dot_dimension_numbers<[1], [0], [0], [1], [0, 0, 1, 1], [], []>} : vector<4x4xf32>, vector<4x256xf32>, vector<4x256xf32> -> vector<4x256xf32>
    %97 = arith.addf %90, %96 : vector<4x256xf32>
    %98 = vector.extract_strided_slice %76 {offsets = [0, 127], sizes = [4, 256], strides = [1, 1]} : vector<4x512xf32> to vector<4x256xf32>
    %99 = vector.broadcast %8 : vector<1x256xf32> to vector<4x256xf32>
    %100 = arith.mulf %98, %99 : vector<4x256xf32>
    %101 = vector.extract_strided_slice %77 {offsets = [3, 0, 0], sizes = [1, 4, 4], strides = [1, 1, 1]} : vector<9x4x4xf32> to vector<1x4x4xf32>
    %102 = vector.shape_cast %101 : vector<1x4x4xf32> to vector<4x4xf32>
    %cst_39 = arith.constant dense<0.000000e+00> : vector<4x256xf32>
    %103 = tpu.matmul %102, %100, %cst_39 {dimension_numbers = #tpu.dot_dimension_numbers<[1], [0], [0], [1], [0, 0, 1, 1], [], []>} : vector<4x4xf32>, vector<4x256xf32>, vector<4x256xf32> -> vector<4x256xf32>
    %104 = arith.addf %97, %103 : vector<4x256xf32>
    %105 = vector.extract_strided_slice %76 {offsets = [0, 128], sizes = [4, 256], strides = [1, 1]} : vector<4x512xf32> to vector<4x256xf32>
    %106 = vector.extract_strided_slice %77 {offsets = [4, 0, 0], sizes = [1, 4, 4], strides = [1, 1, 1]} : vector<9x4x4xf32> to vector<1x4x4xf32>
    %107 = vector.shape_cast %106 : vector<1x4x4xf32> to vector<4x4xf32>
    %cst_40 = arith.constant dense<0.000000e+00> : vector<4x256xf32>
    %108 = tpu.matmul %107, %105, %cst_40 {dimension_numbers = #tpu.dot_dimension_numbers<[1], [0], [0], [1], [0, 0, 1, 1], [], []>} : vector<4x4xf32>, vector<4x256xf32>, vector<4x256xf32> -> vector<4x256xf32>
    %109 = arith.addf %104, %108 : vector<4x256xf32>
    %110 = vector.extract_strided_slice %76 {offsets = [0, 129], sizes = [4, 256], strides = [1, 1]} : vector<4x512xf32> to vector<4x256xf32>
    %111 = vector.broadcast %9 : vector<1x256xf32> to vector<4x256xf32>
    %112 = arith.mulf %110, %111 : vector<4x256xf32>
    %113 = vector.extract_strided_slice %77 {offsets = [5, 0, 0], sizes = [1, 4, 4], strides = [1, 1, 1]} : vector<9x4x4xf32> to vector<1x4x4xf32>
    %114 = vector.shape_cast %113 : vector<1x4x4xf32> to vector<4x4xf32>
    %cst_41 = arith.constant dense<0.000000e+00> : vector<4x256xf32>
    %115 = tpu.matmul %114, %112, %cst_41 {dimension_numbers = #tpu.dot_dimension_numbers<[1], [0], [0], [1], [0, 0, 1, 1], [], []>} : vector<4x4xf32>, vector<4x256xf32>, vector<4x256xf32> -> vector<4x256xf32>
    %116 = arith.addf %109, %115 : vector<4x256xf32>
    %117 = vector.extract_strided_slice %76 {offsets = [0, 143], sizes = [4, 256], strides = [1, 1]} : vector<4x512xf32> to vector<4x256xf32>
    %118 = vector.broadcast %8 : vector<1x256xf32> to vector<4x256xf32>
    %119 = arith.mulf %117, %118 : vector<4x256xf32>
    %120 = vector.extract_strided_slice %77 {offsets = [6, 0, 0], sizes = [1, 4, 4], strides = [1, 1, 1]} : vector<9x4x4xf32> to vector<1x4x4xf32>
    %121 = vector.shape_cast %120 : vector<1x4x4xf32> to vector<4x4xf32>
    %cst_42 = arith.constant dense<0.000000e+00> : vector<4x256xf32>
    %122 = tpu.matmul %121, %119, %cst_42 {dimension_numbers = #tpu.dot_dimension_numbers<[1], [0], [0], [1], [0, 0, 1, 1], [], []>} : vector<4x4xf32>, vector<4x256xf32>, vector<4x256xf32> -> vector<4x256xf32>
    %123 = arith.addf %116, %122 : vector<4x256xf32>
    %124 = vector.extract_strided_slice %76 {offsets = [0, 144], sizes = [4, 256], strides = [1, 1]} : vector<4x512xf32> to vector<4x256xf32>
    %125 = vector.extract_strided_slice %77 {offsets = [7, 0, 0], sizes = [1, 4, 4], strides = [1, 1, 1]} : vector<9x4x4xf32> to vector<1x4x4xf32>
    %126 = vector.shape_cast %125 : vector<1x4x4xf32> to vector<4x4xf32>
    %cst_43 = arith.constant dense<0.000000e+00> : vector<4x256xf32>
    %127 = tpu.matmul %126, %124, %cst_43 {dimension_numbers = #tpu.dot_dimension_numbers<[1], [0], [0], [1], [0, 0, 1, 1], [], []>} : vector<4x4xf32>, vector<4x256xf32>, vector<4x256xf32> -> vector<4x256xf32>
    %128 = arith.addf %123, %127 : vector<4x256xf32>
    %129 = vector.extract_strided_slice %76 {offsets = [0, 145], sizes = [4, 256], strides = [1, 1]} : vector<4x512xf32> to vector<4x256xf32>
    %130 = vector.broadcast %9 : vector<1x256xf32> to vector<4x256xf32>
    %131 = arith.mulf %129, %130 : vector<4x256xf32>
    %132 = vector.extract_strided_slice %77 {offsets = [8, 0, 0], sizes = [1, 4, 4], strides = [1, 1, 1]} : vector<9x4x4xf32> to vector<1x4x4xf32>
    %133 = vector.shape_cast %132 : vector<1x4x4xf32> to vector<4x4xf32>
    %cst_44 = arith.constant dense<0.000000e+00> : vector<4x256xf32>
    %134 = tpu.matmul %133, %131, %cst_44 {dimension_numbers = #tpu.dot_dimension_numbers<[1], [0], [0], [1], [0, 0, 1, 1], [], []>} : vector<4x4xf32>, vector<4x256xf32>, vector<4x256xf32> -> vector<4x256xf32>
    %135 = arith.addf %128, %134 : vector<4x256xf32>
    %c0_45 = arith.constant 0 : index
    %c0_46 = arith.constant 0 : index
    %136 = vector.load %arg5[%c0_45, %c0_46] : memref<4x1xf32, #tpu.memory_space<vmem>>, vector<4x1xf32>
    %137 = vector.broadcast %136 : vector<4x1xf32> to vector<4x256xf32>
    %138 = arith.addf %135, %137 : vector<4x256xf32>
    %c0_47 = arith.constant 0 : index
    %c0_48 = arith.constant 0 : index
    %c0_49 = arith.constant 0 : index
    %139 = vector.load %arg1[%c0_47, %c0_48, %c0_49] : memref<1x4x256xf32, #tpu.memory_space<vmem>>, vector<1x4x256xf32>
    %140 = vector.shape_cast %139 : vector<1x4x256xf32> to vector<4x256xf32>
    %141 = arith.addf %138, %140 : vector<4x256xf32>
    %cst_50 = arith.constant 0.000000e+00 : f32
    %142 = vector.broadcast %cst_50 : f32 to vector<4x256xf32>
    %143 = arith.maximumf %141, %142 : vector<4x256xf32>
    %c0_51 = arith.constant 0 : index
    %c0_52 = arith.constant 0 : index
    %c0_53 = arith.constant 0 : index
    %144 = vector.load %arg7[%c0_51, %c0_52, %c0_53] : memref<1x4x256xf32, #tpu.memory_space<vmem>>, vector<1x4x256xf32>
    %145 = vector.shape_cast %144 : vector<1x4x256xf32> to vector<4x256xf32>
    %146 = vector.shape_cast %143 : vector<4x256xf32> to vector<1x4x256xf32>
    tpu.vector_store %arg7[%c0_51, %c0_52, %c0_53], %146 {strides = array<i32>} : memref<1x4x256xf32, #tpu.memory_space<vmem>>, vector<1x4x256xf32>,
    return
  }
  func.func @transform_0(%arg0: i32) -> (i32, i32, i32) {
    %c0_i32 = arith.constant 0 : i32
    %c0_i32_0 = arith.constant 0 : i32
    %c0_i32_1 = arith.constant 0 : i32
    return %arg0, %c0_i32, %c0_i32_0 : i32, i32, i32
  }
  func.func @transform_1(%arg0: i32) -> (i32, i32, i32) {
    %c0_i32 = arith.constant 0 : i32
    %c0_i32_0 = arith.constant 0 : i32
    %c0_i32_1 = arith.constant 0 : i32
    %c0_i32_2 = arith.constant 0 : i32
    return %c0_i32, %c0_i32_0, %c0_i32_1 : i32, i32, i32
  }
  func.func @transform_2(%arg0: i32) -> (i32, i32) {
    %c0_i32 = arith.constant 0 : i32
    %c0_i32_0 = arith.constant 0 : i32
    %c0_i32_1 = arith.constant 0 : i32
    return %c0_i32, %c0_i32_0 : i32, i32
  }
  func.func @transform_3(%arg0: i32) -> (i32, i32, i32) {
    %c0_i32 = arith.constant 0 : i32
    %c0_i32_0 = arith.constant 0 : i32
    %c0_i32_1 = arith.constant 0 : i32
    %c0_i32_2 = arith.constant 0 : i32
    return %c0_i32, %c0_i32_0, %c0_i32_1 : i32, i32, i32
  }
  func.func @transform_4(%arg0: i32) -> (i32, i32) {
    %c0_i32 = arith.constant 0 : i32
    %c0_i32_0 = arith.constant 0 : i32
    %c0_i32_1 = arith.constant 0 : i32
    return %c0_i32, %c0_i32_0 : i32, i32
  }
  func.func @transform_5(%arg0: i32) -> (i32, i32) {
    %c0_i32 = arith.constant 0 : i32
    %c0_i32_0 = arith.constant 0 : i32
    %c0_i32_1 = arith.constant 0 : i32
    return %c0_i32, %c0_i32_0 : i32, i32
  }
  func.func @transform_6(%arg0: i32) -> (i32, i32, i32) {
    %c0_i32 = arith.constant 0 : i32
    %c0_i32_0 = arith.constant 0 : i32
    %c0_i32_1 = arith.constant 0 : i32
    return %arg0, %c0_i32, %c0_i32_0 : i32, i32, i32
  }
}

</mosaic_0001>

<bundles_post_ra>
// kernel: tpu_custom_call.1
= control target key start
LH: loop header
LB: loop body
LE: loop exit
PB: predicated region body
PF: predicated region fallthrough
CT: control target
= control target key end

     0   :  { %11 = vsyncpa [#allocation5], 0  ;;  %s2704_s0 = inlined_call_operand.vmem [shape: f32[2,4,256], index: 0, kind: input, shape index: {}]   ;;  %s2705_s1 = inlined_call_operand.vmem [shape: f32[9,4,4], index: 1, kind: input, shape index: {}]   ;;  %s2706_s2 = inlined_call_operand.vmem [shape: f32[4,1], index: 2, kind: input, shape index: {}]   ;;  %s2707_s3 = inlined_call_operand.vmem [shape: f32[9,4,4], index: 3, kind: input, shape index: {}]   ;;  %s2708_s4 = inlined_call_operand.vmem [shape: f32[4,1], index: 4, kind: input, shape index: {}]   ;;  %s2709_s5 = inlined_call_operand.vmem [shape: f32[2,256], index: 5, kind: input, shape index: {}]   ;;  %s2710_s6 = inlined_call_operand.hbm [shape: f32[2,4,256], index: 6, kind: output, shape index: {}]  }
   0x1   :  { %13 = vsyncpa [#allocation5 + $0x1], 0  ;;  %s2316_s21 = smov 0   ;;  %s2318_s22 = smov 0  }
   0x2   :  { %s2320_s23 = smov 0   ;;  %s2322_s24 = smov 0  }
   0x3 LB: > { %s2337_s25 = sadd.s32 4294967295, %s2268_s24   ;;  %s2084_s26 = sadd.s32 4294967294, %s2268_s24   ;;  %s2268_s24 = sphi %s2322_s24, %s2716_s24   ;;  %s2264_s23 = sphi %s2320_s23, %s2715_s23   ;;  %s2260_s22 = sphi %s2318_s22, %s2714_s22   ;;  %s2256_s21 = sphi %s2316_s21, %s2713_s21  }
   0x4   : > { %s2341_s27 = sadd.s32 1, %s2268_s24   ;;  %s157_s28 = sadd.s32 1, %s2264_s23 }
   0x5   : > { %s154_s29 = ssub.s32 %s2268_s24, %s2341_s27  ;;  %p167_p0 = scmp.ne.s32.totalorder %s2264_s23, %s2260_s22 }
   0x6   : > { %p155_p1 = scmp.eq.s32.totalorder %s154_s29, 0  ;;  %p168_p2 = scmp.eq.s32.totalorder %s2337_s25, 1 }
   0x7   : > { %p173_p3 = scmp.ne.s32.totalorder %s2260_s22, %s2256_s21  ;;  %p174_p4 = scmp.eq.s32.totalorder %s2084_s26, 1 }
   0x8   : > { %s2352_s30 = scalar_select %p155_p1, %s2264_s23, %s157_s28  }
   0x9   : > { %p2354_p5 = por %p168_p2, %p167_p0  ;;  %p2358_p6 = por %p174_p4, %p173_p3 }
   0xa   : > { %p2087_p7 = scmp.ge.s32.totalorder %s2268_s24, 1  ;;  %p215_p8 = scmp.lt.s32.totalorder %s2268_s24, 3 }
   0xc   : > { %p216_p9 = pnand %p2087_p7, %p215_p8 }
   0xd   : > { %p245_p10 = scmp.lt.s32.totalorder (!%p216_p9), %s2337_s25, 1  ;;  %s2271_s16 = smov (!%p216_p9), 111  }
   0xe   : > { %219 = sbr.rel (%p216_p9) target bundleno = 889 (0x379), region = 44  ;;  %s2272_s17 = smov (!%p216_p9), 127  }
   0xf   : > { %s2273_s18 = smov (!%p216_p9), 113   ;;  %s2274_s19 = smov (!%p216_p9), 16  }
  0x10   : > { %s2275_s20 = smov (!%p216_p9), 17   ;;  %s2276_s26 = smov (!%p216_p9), 15  }
  0x11   : > { %s2277_s28 = smov (!%p216_p9), 1   ;;  %s2278_s10 = smov (!%p216_p9), 112  }
  0x13   : > { %v269_v0 = vlaneseq  ;;  %v2270_v1 = vmov 0.0   ;;  %v256_v3 = vld [vmem:[%s2709_s5] sm:$0xf]  ;;  %s246_s11 = scalar_select %p245_p10, %s2337_s25, 1  ;;  %vm293_vm0 = vcmask 908288   ;;  %vm505_vm1 = vcmask 924672  }
  0x14   : > { %250 = vst [vmem:[#allocation2] sm:$0xff] %v2270_v1  ;;  %251 = vst [vmem:[#allocation2 + $0x8] sm:$0xff] %v2270_v1  ;;  %384 = vmatprep.mubr.f32.mxu0 %v2270_v1  ;;  %474 = vmatprep.mubr.f32.mxu1 %v2270_v1  ;;  %vm606_vm2 = vcmask 1039360   ;;  %vm308_vm3 = vcmask 130048   ;;  %vm315_vm4 = vcmask 1043456   ;;  %vm311_vm5 = vcmask 31744  }
  0x15   : > { %252 = vst [vmem:[#allocation3] sm:$0xff] %v2270_v1  ;;  %253 = vst [vmem:[#allocation3 + $0x8] sm:$0xff] %v2270_v1  ;;  %v270_v2 = vshrl.u32 %v269_v0, 7  ;;  %s2150_s12 = sshll.u32 %s246_s11, 3  ;;  %v260_v45 = vld [vmem:[%s2705_s1 + $0x4] sm:$0xf] }
  0x16   : > { %s249_s15 = scalar_lea.vmem %s2704_s0, %s2150_s12  ;;  %v2279_v48 = vmov 0   ;;  %v1152_v50 = vld [vmem:[%s2706_s2] sm:$0xf]  ;;  %vm520_vm6 = vcmask 121856   ;;  %vm400_vm7 = vcmask 138240   ;;  %vm621_vm8 = vcmask 7168  }
  0x17   : > { %v271_v4 = vsub.s32 0, %v270_v2  ;;  %v275_v5 = vsub.s32 2, %v270_v2  ;;  %v483_v6 = vsub.s32 1, %v270_v2  ;;  %v487_v7 = vsub.s32 3, %v270_v2  ;;  %v2378_v12 = vld [vmem:[%s249_s15] sm:$0xff]  ;;  %2201 = vset.pattern.permute.xlu0 %v2279_v48  ;;  %2202 = vset.pattern.permute.xlu1 %v2279_v48 }
  0x18   : > { %255 = vst [vmem:[#allocation2 + $0x4] sm:$0xff] %v2378_v12  ;;  %vm977_vm9 = vcmask 916480  }
  0x19   : > { %v272_v8 = vrot.slane %v256_v3, %v271_v4  ;;  %v276_v9 = vrot.slane %v256_v3, %v275_v5  ;;  %v484_v10 = vrot.slane %v256_v3, %v483_v6  ;;  %v488_v11 = vrot.slane %v256_v3, %v487_v7  ;;  %v261_v7 = vld [vmem:[%s2705_s1 + $0x8] sm:$0xf] }
  0x1b   : > { %v282_v13 = vrot.slane %v272_v8, %v271_v4  ;;  %v286_v14 = vrot.slane %v276_v9, %v271_v4  ;;  %v494_v15 = vrot.slane %v484_v10, %v483_v6  ;;  %v498_v16 = vrot.slane %v488_v11, %v483_v6 }
  0x1d   : > { %v2381_v17 = vcombine.low %v282_v13, %v286_v14  ;;  %v2387_v18 = vcombine.low %v494_v15, %v498_v16  ;;  %v259_v15 = vld [vmem:[%s2705_s1] sm:$0xf]  ;;  %v263_v16 = vld [vmem:[%s2705_s1 + $0x10] sm:$0xf] }
  0x1f   : > { %290 = vrot.lane.b32.xlu0 %v2381_v17, %s2271_s16  ;;  %603 = vrot.lane.b32.xlu1 %v2381_v17, %s2272_s17  ;;  %v257_v19 = vld [vmem:[#allocation2] sm:$0xff]  ;;  %v2392_v20 = vld [vmem:[#allocation2 + $0x8] sm:$0xff] }
  0x20   : > { %v2399_v21 = vcombine.high %v257_v19, %v257_v19  ;;  %v970_v49 = vcombine.high %v2392_v20, %v2392_v20 }
  0x23   : > { %502 = vrot.lane.b32.xlu0 %v2387_v18, %s2273_s18  ;;  %302 = vrot.lane.b32.xlu1 %v257_v19, %s2274_s19 }
  0x27   : > { %784 = vrot.lane.b32.xlu1 %v257_v19, %s2272_s17  ;;  %306 = vrot.lane.b32.xlu0 %v2392_v20, %s2274_s19 }
  0x2b   : > { %879 = vrot.lane.b32.xlu1 %v2392_v20, %s2273_s18  ;;  %786 = vrot.lane.b32.xlu0 %v2392_v20, %s2272_s17 }
  0x2f   : > { %304 = vrot.lane.b32.xlu1 %v2399_v21, %s2274_s19  ;;  %877 = vrot.lane.b32.xlu0 %v257_v19, %s2273_s18 }
  0x91   : > { %v291_v22 = vpop.permute.xlu0 %290  ;;  %v604_v23 = vpop.permute.xlu1 %603 }
  0x92   : > { %v2406_v24 = vrot.slane %v291_v22, 4  ;;  %v2408_v25 = vrot.slane %v604_v23, 4 }
  0x94   : > { %v298_v26 = vmul.f32 %v2406_v24, %v2392_v20  ;;  %v611_v30 = vmul.f32 %v2408_v25, %v2392_v20  ;;  %v2421_v32 = vsel %vm293_vm0, %v2406_v24, %v291_v22  ;;  %v2433_v37 = vsel %vm606_vm2, %v2408_v25, %v604_v23 }
  0x95   : > { %v503_v27 = vpop.permute.xlu0 %502  ;;  %v303_v28 = vpop.permute.xlu1 %302  ;;  %v297_v35 = vmul.f32 %v2421_v32, %v257_v19  ;;  %v610_v39 = vmul.f32 %v2433_v37, %v257_v19 }
  0x96   : > { %v2412_v29 = vrot.slane %v503_v27, 4  ;;  %398 = vrot.lane.b32.xlu1 %v298_v26, %s2275_s20  ;;  %v262_v26 = vld [vmem:[%s2705_s1 + $0xc] sm:$0xf] }
  0x97   : > { %v393_v46 = vcombine.high %v297_v35, %v297_v35  ;;  %v614_v47 = vcombine.high %v610_v39, %v610_v39 }
  0x98   : > { %v510_v31 = vmul.f32 %v2412_v29, %v2392_v20  ;;  %v2425_v33 = vsel %vm505_vm1, %v2412_v29, %v503_v27 }
  0x99   : > { %v785_v34 = vpop.permute.xlu1 %784  ;;  %v509_v36 = vmul.f32 %v2425_v33, %v257_v19  ;;  %v307_v41 = vpop.permute.xlu0 %306 }
  0x9a   : > { %518 = vrot.lane.b32.xlu0 %v510_v31, %s2276_s26  ;;  %619 = vrot.lane.b32.xlu1 %v611_v30, %s2277_s28  ;;  %v788_v59 = vrot.slane %v785_v34, 4 }
  0x9b   : > { %v513_v40 = vcombine.high %v509_v36, %v509_v36 }
  0x9d   : > { %v880_v38 = vpop.permute.xlu1 %879  ;;  %v787_v51 = vpop.permute.xlu0 %786 }
  0x9e   : > { %514 = vrot.lane.b32.xlu1 %v509_v36, %s2276_s26  ;;  %394 = vrot.lane.b32.xlu0 %v297_v35, %s2275_s20  ;;  %v882_v54 = vrot.slane %v880_v38, 4  ;;  %v789_v60 = vrot.slane %v787_v51, 4  ;;  %v264_v35 = vld [vmem:[%s2705_s1 + $0x14] sm:$0xf] }
  0xa0   : > { %v790_v0 = vsel %vm315_vm4, %v788_v59, %v789_v60 }
  0xa1   : > { %v305_v42 = vpop.permute.xlu1 %304  ;;  %v878_v52 = vpop.permute.xlu0 %877  ;;  %v791_v8 = vsel %vm606_vm2, %v790_v0, %v787_v51 }
  0xa2   : > { %516 = vrot.lane.b32.xlu1 %v513_v40, %s2276_s26  ;;  %615 = vrot.lane.b32.xlu0 %v610_v39, %s2277_s28  ;;  %v310_v43 = vsel %vm308_vm3, %v305_v42, %v307_v41  ;;  %v309_v44 = vsel %vm308_vm3, %v303_v28, %v305_v42  ;;  %v881_v55 = vrot.slane %v878_v52, 4  ;;  %v265_v28 = vld [vmem:[%s2705_s1 + $0x18] sm:$0xf] }
  0xa3   : > { %2091 = vmatprep.subr.msk.mxu0 %vm315_vm4, %v310_v43  ;;  %v266_v43 = vld [vmem:[%s2705_s1 + $0x1c] sm:$0xf] }
  0xa4   : > { %2092 = vmatpush1.msk.msra.mxu0 %vm315_vm4, %v309_v44  ;;  %v883_v58 = vsel %vm315_vm4, %v881_v55, %v882_v54 }
  0xa5   : > { %2093 = vmatmul.mubr.msk.f32.vlgmr.msra.gmra.mxu0 %vm311_vm5, %v260_v45  ;;  %v884_v63 = vsel %vm505_vm1, %v883_v58, %v880_v38 }
  0xa6   : > { %396 = vrot.lane.b32.xlu0 %v393_v46, %s2275_s20  ;;  %1060 = vrot.lane.b32.xlu1 %v257_v19, %s2271_s16  ;;  %v887_v2 = vmul.f32 %v884_v63, %v2381_v17  ;;  %v794_v19 = vmul.f32 %v791_v8, %v2387_v18  ;;  %v267_v46 = vld [vmem:[%s2705_s1 + $0x20] sm:$0xf] }
  0xa7   : > { %594 = vmatprep.mubr.f32.mxu0 %v2270_v1 }
  0xa8   : > { %v889_v10 = vcombine.high %v887_v2, %v887_v2  ;;  %v796_v27 = vcombine.high %v794_v19, %v794_v19 }
  0xaa   : > { %617 = vrot.lane.b32.xlu0 %v614_v47, %s2277_s28  ;;  %973 = vrot.lane.b32.xlu1 %v2392_v20, %s2278_s10 }
  0xae   : > { %1062 = vrot.lane.b32.xlu0 %v2392_v20, %s2271_s16  ;;  %971 = vrot.lane.b32.xlu1 %v2399_v21, %s2278_s10 }
  0xb2   : > { %975 = vrot.lane.b32.xlu0 %v970_v49, %s2278_s10 }
  0xb6   : > { %1155 = vperm.xlu0 %2201, %v1152_v50  }
 0x108   : > { %v399_v53 = vpop.permute.xlu1 %398 }
 0x10c   : > { %v519_v56 = vpop.permute.xlu0 %518  ;;  %v620_v57 = vpop.permute.xlu1 %619 }
 0x110   : > { %v515_v61 = vpop.permute.xlu1 %514  ;;  %v395_v62 = vpop.permute.xlu0 %394 }
 0x114   : > { %v517_v3 = vpop.permute.xlu1 %516  ;;  %v616_v4 = vpop.permute.xlu0 %615 }
 0x115   : > { %v521_v5 = vsel %vm520_vm6, %v515_v61, %v517_v3  ;;  %v522_v6 = vsel %vm520_vm6, %v517_v3, %v519_v56 }
 0x116   : > { %2097 = vmatprep.subr.msk.mxu0 %vm315_vm4, %v522_v6 }
 0x117   : > { %2098 = vmatpush1.msk.msra.mxu0 %vm315_vm4, %v521_v5 }
 0x118   : > { %2099 = vmatmul.mubr.msk.f32.vlgmr.msra.gmra.mxu0 %vm311_vm5, %v261_v7  ;;  %2103 = vmatprep.subr.msk.mxu0 %vm315_vm4, %v2392_v20  ;;  %v397_v9 = vpop.permute.xlu0 %396  ;;  %v1061_v11 = vpop.permute.xlu1 %1060 }
 0x119   : > { %2104 = vmatpush1.msk.msra.mxu0 %vm315_vm4, %v2399_v21  ;;  %v402_v13 = vsel %vm400_vm7, %v397_v9, %v399_v53  ;;  %v401_v14 = vsel %vm400_vm7, %v395_v62, %v397_v9  ;;  %775 = vmatprep.mubr.f32.mxu0 %v2270_v1  ;;  %v1064_v31 = vrot.slane %v1061_v11, 4 }
 0x11a   : > { %2109 = vmatprep.subr.msk.mxu0 %vm315_vm4, %v889_v10  ;;  %2094 = vmatprep.subr.msk.mxu1 %vm315_vm4, %v402_v13 }
 0x11b   : > { %2095 = vmatpush1.msk.msra.mxu1 %vm315_vm4, %v401_v14 }
 0x11c   : > { %2096 = vmatmul.mubr.msk.f32.vlgmr.msra.gmra.mxu1 %vm311_vm5, %v259_v15  ;;  %2105 = vmatmul.mubr.msk.f32.vlgmr.msra.gmra.mxu0 %vm311_vm5, %v263_v16  ;;  %v618_v20 = vpop.permute.xlu0 %617  ;;  %v974_v23 = vpop.permute.xlu1 %973 }
 0x11d   : > { %2110 = vmatpush1.msk.msra.mxu0 %vm315_vm4, %v887_v2  ;;  %v622_v21 = vsel %vm621_vm8, %v616_v4, %v618_v20  ;;  %v623_v22 = vsel %vm621_vm8, %v618_v20, %v620_v57  ;;  %695 = vmatprep.mubr.f32.mxu1 %v2270_v1 }
 0x11e   : > { %2100 = vmatprep.subr.msk.mxu1 %vm315_vm4, %v623_v22  ;;  %961 = vmatprep.mubr.f32.mxu0 %v2270_v1 }
 0x11f   : > { %2101 = vmatpush1.msk.msra.mxu1 %vm315_vm4, %v622_v21 }
 0x120   : > { %2102 = vmatmul.mubr.msk.f32.vlgmr.msra.gmra.mxu1 %vm311_vm5, %v262_v26  ;;  %2106 = vmatprep.subr.msk.mxu1 %vm315_vm4, %v796_v27  ;;  %v1063_v30 = vpop.permute.xlu0 %1062  ;;  %v972_v38 = vpop.permute.xlu1 %971 }
 0x121   : > { %v1065_v34 = vrot.slane %v1063_v30, 4  ;;  %2107 = vmatpush1.msk.msra.mxu1 %vm315_vm4, %v794_v19  ;;  %868 = vmatprep.mubr.f32.mxu1 %v2270_v1  ;;  %v978_v44 = vsel %vm977_vm9, %v972_v38, %v974_v23 }
 0x122   : > { %2111 = vmatmul.mubr.msk.f32.vlgmr.msra.gmra.mxu0 %vm311_vm5, %v265_v28 }
 0x123   : > { %v1066_v36 = vsel %vm315_vm4, %v1064_v31, %v1065_v34  ;;  %1143 = vmatprep.mubr.f32.mxu0 %v2270_v1 }
 0x124   : > { %v1067_v39 = vsel %vm293_vm0, %v1066_v36, %v1063_v30  ;;  %2108 = vmatmul.mubr.msk.f32.vlgmr.msra.gmra.mxu1 %vm311_vm5, %v264_v35  ;;  %v976_v40 = vpop.permute.xlu0 %975 }
 0x125   : > { %v1069_v41 = vmul.f32 %v1067_v39, %v2387_v18  ;;  %v979_v42 = vsel %vm977_vm9, %v974_v23, %v976_v40  ;;  %1051 = vmatprep.mubr.f32.mxu1 %v2270_v1 }
 0x126   : > { %2112 = vmatprep.subr.msk.mxu1 %vm315_vm4, %v979_v42 }
 0x127   : > { %v1071_v45 = vcombine.high %v1069_v41, %v1069_v41  ;;  %2113 = vmatpush1.msk.msra.mxu1 %vm315_vm4, %v978_v44 }
 0x128   : > { %2114 = vmatmul.mubr.msk.f32.vlgmr.msra.gmra.mxu1 %vm311_vm5, %v266_v43 }
 0x129   : > { %2115 = vmatprep.subr.msk.mxu0 %vm315_vm4, %v1071_v45  ;;  %1262 = vmatprep.mubr.f32.mxu1 %v2270_v1 }
 0x12a   : > { %2116 = vmatpush1.msk.msra.mxu0 %vm315_vm4, %v1069_v41 }
 0x12b   : > { %2117 = vmatmul.mubr.msk.f32.vlgmr.msra.gmra.mxu0 %vm311_vm5, %v267_v46 }
 0x12c   : > { %1351 = vmatprep.mubr.f32.mxu0 %v2270_v1 }
 0x131   : > { %v1156_v16 = vpop.permute.xlu0 %1155 }
 0x165   : > { %v386_v47 = vpop.f32.mrf.mxu0 }
 0x167   : > { %v388_v48 = vpop.f32.mrf.mxu0 }
 0x1d8   : > { %v596_v49 = vpop.f32.mrf.mxu0 }
 0x1da   : > { %v598_v50 = vpop.f32.mrf.mxu0 }
 0x1dc   : > { %v476_v51 = vpop.f32.mrf.mxu1  ;;  %v777_v52 = vpop.f32.mrf.mxu0 }
 0x1dd   : > { %v477_v53 = vadd.f32 %v476_v51, %v386_v47  ;;  %v1170_v51 = vld [vmem:[%s2707_s3 + $0x4] sm:$0xf] }
 0x1de   : > { %v478_v54 = vpop.f32.mrf.mxu1  ;;  %v779_v55 = vpop.f32.mrf.mxu0 }
 0x1df   : > { %v601_v56 = vadd.f32 %v596_v49, %v477_v53  ;;  %v479_v57 = vadd.f32 %v478_v54, %v388_v48 }
 0x1e0   : > { %v697_v58 = vpop.f32.mrf.mxu1 }
 0x1e1   : > { %v602_v59 = vadd.f32 %v598_v50, %v479_v57  ;;  %v702_v60 = vadd.f32 %v697_v58, %v601_v56 }
 0x1e2   : > { %v699_v61 = vpop.f32.mrf.mxu1  ;;  %v963_v62 = vpop.f32.mrf.mxu0 }
 0x1e3   : > { %v782_v63 = vadd.f32 %v777_v52, %v702_v60  ;;  %v703_v0 = vadd.f32 %v699_v61, %v602_v59 }
 0x1e4   : > { %v870_v2 = vpop.f32.mrf.mxu1  ;;  %v965_v6 = vpop.f32.mrf.mxu0 }
 0x1e5   : > { %v783_v3 = vadd.f32 %v779_v55, %v703_v0  ;;  %v875_v4 = vadd.f32 %v870_v2, %v782_v63 }
 0x1e6   : > { %v872_v5 = vpop.f32.mrf.mxu1 }
 0x1e7   : > { %v968_v7 = vadd.f32 %v963_v62, %v875_v4  ;;  %v876_v8 = vadd.f32 %v872_v5, %v783_v3  ;;  %v1171_v5 = vld [vmem:[%s2707_s3 + $0x8] sm:$0xf] }
 0x1e8   : > { %v1053_v9 = vpop.f32.mrf.mxu1 }
 0x1e9   : > { %v969_v10 = vadd.f32 %v965_v6, %v876_v8  ;;  %v1058_v11 = vadd.f32 %v1053_v9, %v968_v7 }
 0x1ea   : > { %v1055_v13 = vpop.f32.mrf.mxu1 }
 0x1eb   : > { %v1059_v14 = vadd.f32 %v1055_v13, %v969_v10  ;;  %v1145_v15 = vpop.f32.mrf.mxu0  ;;  %v1173_v13 = vld [vmem:[%s2707_s3 + $0x10] sm:$0xf] }
 0x1ec   : > { %v1150_v19 = vadd.f32 %v1145_v15, %v1058_v11  ;;  %v1169_v11 = vld [vmem:[%s2707_s3] sm:$0xf] }
 0x1ed   : > { %v1147_v20 = vpop.f32.mrf.mxu0 }
 0x1ee   : > { %v1151_v21 = vadd.f32 %v1147_v20, %v1059_v14  ;;  %v1158_v22 = vadd.f32 %v1156_v16, %v1150_v19 }
 0x1f0   : > { %v1159_v23 = vadd.f32 %v1156_v16, %v1151_v21  ;;  %v1160_v26 = vmax.f32 %v1158_v22, 0.0  ;;  %v1172_v21 = vld [vmem:[%s2707_s3 + $0xc] sm:$0xf] }
 0x1f2   : > { %v1161_v27 = vmax.f32 %v1159_v23, 0.0  ;;  %v1175_v23 = vld [vmem:[%s2707_s3 + $0x18] sm:$0xf] }
 0x1f4   : > { %v1164_v28 = vcombine.low %v1160_v26, %v1161_v27 }
 0x1f6   : > { %1166 = vst [vmem:[#allocation3 + $0x4] sm:$0xff] %v1164_v28 }
 0x1fd   : > { %v2539_v30 = vld [vmem:[#allocation3 + $0x8] sm:$0xff]  ;;  %v1167_v31 = vld [vmem:[#allocation3] sm:$0xff] }
 0x1fe   : > { %1187 = vrot.lane.b32.xlu1 %v2539_v30, %s2274_s19  ;;  %1183 = vrot.lane.b32.xlu0 %v1167_v31, %s2274_s19  ;;  %v1179_v34 = vmul.f32 %v2539_v30, %v2406_v24  ;;  %v2552_v35 = vcombine.high %v1167_v31, %v1167_v31  ;;  %v1358_v36 = vmul.f32 %v1167_v31, %v2425_v33  ;;  %v1989_v33 = vld [vmem:[%s2708_s4] sm:$0xf] }
 0x1ff   : > { %v1178_v38 = vmul.f32 %v1167_v31, %v2421_v32  ;;  %v1452_v39 = vmul.f32 %v2539_v30, %v2408_v25  ;;  %v1359_v24 = vmul.f32 %v2539_v30, %v2412_v29  ;;  %v1451_v41 = vmul.f32 %v1167_v31, %v2433_v37 }
 0x200   : > { %v1362_v40 = vcombine.high %v1358_v36, %v1358_v36  ;;  %v1808_v29 = vcombine.high %v2539_v30, %v2539_v30 }
 0x201   : > { %v1271_v32 = vcombine.high %v1178_v38, %v1178_v38  ;;  %v1455_v25 = vcombine.high %v1451_v41, %v1451_v41 }
 0x202   : > { %1626 = vrot.lane.b32.xlu1 %v2539_v30, %s2272_s17  ;;  %1624 = vrot.lane.b32.xlu0 %v1167_v31, %s2272_s17  ;;  %s2280_s17 = smov [#allocation4]  }
 0x206   : > { %1716 = vrot.lane.b32.xlu1 %v1167_v31, %s2273_s18  ;;  %1718 = vrot.lane.b32.xlu0 %v2539_v30, %s2273_s18  ;;  %s2212_s18 = sshll.u32 %s2280_s17, 4  ;;  %s2213_s18 = int_to_ptr.vmem [resolvable:$false] %s2212_s18 }
 0x20a   : > { %1276 = vrot.lane.b32.xlu0 %v1179_v34, %s2275_s20  ;;  %1185 = vrot.lane.b32.xlu1 %v2552_v35, %s2274_s19 }
 0x20e   : > { %1363 = vrot.lane.b32.xlu0 %v1358_v36, %s2276_s26  ;;  %1272 = vrot.lane.b32.xlu1 %v1178_v38, %s2275_s20 }
 0x212   : > { %1460 = vrot.lane.b32.xlu0 %v1452_v39, %s2277_s28  ;;  %1367 = vrot.lane.b32.xlu1 %v1359_v24, %s2276_s26  ;;  %v1176_v24 = vld [vmem:[%s2707_s3 + $0x1c] sm:$0xf] }
 0x216   : > { %1365 = vrot.lane.b32.xlu0 %v1362_v40, %s2276_s26  ;;  %1456 = vrot.lane.b32.xlu1 %v1451_v41, %s2277_s28  ;;  %s242_s26 = sand.u32 1, %s2260_s22  }
 0x217   : > { %s2011_s13 = scalar_lea.sflag [#allocation5], %s242_s26 }
 0x21a   : > { %1897 = vrot.lane.b32.xlu0 %v1167_v31, %s2271_s16  ;;  %1274 = vrot.lane.b32.xlu1 %v1271_v32, %s2275_s20 }
 0x21e   : > { %1811 = vrot.lane.b32.xlu0 %v2539_v30, %s2278_s10  ;;  %1458 = vrot.lane.b32.xlu1 %v1455_v25, %s2277_s28  ;;  %s2088_s28 = sshll.u32 %s242_s26, 3 }
 0x21f   : > { %s244_s15 = scalar_lea.vmem [#allocation4], %s2088_s28 }
 0x220   : > { %s2025_s29 = sshll.u32 %s244_s15, 4  ;;  %s2026_s29 = int_to_ptr.vmem [resolvable:$true] %s2025_s29 }
 0x221   : > { %s2208_s14 = scalar_lea.vmem %s2026_s29, 128  ;;  %p2215_p0 = scmp.lt.s32.totalorder %s2026_s29, %s2213_s18 }
 0x222   : > { %1809 = vrot.lane.b32.xlu0 %v2552_v35, %s2278_s10  ;;  %1899 = vrot.lane.b32.xlu1 %v2539_v30, %s2271_s16  ;;  %p2209_p11 = scmp.ne.s32.totalorder %s2026_s29, %s2208_s14 }
 0x224   : > { %p2210_p12 = pnand %p2209_p11, %p2354_p5 }
 0x226   : > { %1813 = vrot.lane.b32.xlu1 %v1808_v29, %s2278_s10  ;;  %s2151_s10 = sshll.u32 %s2337_s25, 7  ;;  %p2211_p13 = pneg %p2210_p12 }
 0x227   : > { %s2023_s12 = scalar_lea.hbm %s2710_s6, %s2151_s10  ;;  %s2214_s25 = scalar_lea.vmem %s2213_s18, 256 }
 0x228   : > { %p2216_p1 = scmp.lt.s32.totalorder %s2214_s25, %s2208_s14 }
 0x22a   : > { %1992 = vperm.xlu1 %2202, %v1989_v33   ;;  %p2217_p2 = por %p2216_p1, %p2215_p0 }
 0x22c   : > { %p2218_p3 = pnand %p2217_p2, %p2211_p13 }
 0x270   : > { %v1188_v37 = vpop.permute.xlu1 %1187  ;;  %v1184_v42 = vpop.permute.xlu0 %1183 }
 0x274   : > { %v1627_v43 = vpop.permute.xlu1 %1626  ;;  %v1625_v44 = vpop.permute.xlu0 %1624 }
 0x275   : > { %v1629_v57 = vrot.slane %v1627_v43, 4  ;;  %v1628_v58 = vrot.slane %v1625_v44, 4 }
 0x277   : > { %v1630_v62 = vsel %vm315_vm4, %v1628_v58, %v1629_v57 }
 0x278   : > { %v1717_v45 = vpop.permute.xlu1 %1716  ;;  %v1719_v46 = vpop.permute.xlu0 %1718  ;;  %v1631_v6 = vsel %vm606_vm2, %v1630_v62, %v1627_v43 }
 0x279   : > { %v1720_v52 = vrot.slane %v1717_v45, 4  ;;  %v1721_v53 = vrot.slane %v1719_v46, 4  ;;  %v1633_v14 = vmul.f32 %v1631_v6, %v2387_v18 }
 0x27b   : > { %v1722_v56 = vsel %vm315_vm4, %v1720_v52, %v1721_v53  ;;  %v1635_v22 = vcombine.high %v1633_v14, %v1633_v14 }
 0x27c   : > { %v1277_v47 = vpop.permute.xlu0 %1276  ;;  %v1186_v48 = vpop.permute.xlu1 %1185  ;;  %v1723_v61 = vsel %vm505_vm1, %v1722_v56, %v1719_v46 }
 0x27d   : > { %v1189_v49 = vsel %vm308_vm3, %v1184_v42, %v1186_v48  ;;  %v1190_v50 = vsel %vm308_vm3, %v1186_v48, %v1188_v37  ;;  %v1725_v63 = vmul.f32 %v1723_v61, %v2381_v17 }
 0x27e   : > { %2118 = vmatprep.subr.msk.mxu1 %vm315_vm4, %v1190_v50 }
 0x27f   : > { %2119 = vmatpush1.msk.msra.mxu1 %vm315_vm4, %v1189_v49  ;;  %v1727_v7 = vcombine.high %v1725_v63, %v1725_v63 }
 0x280   : > { %v1364_v54 = vpop.permute.xlu0 %1363  ;;  %v1273_v55 = vpop.permute.xlu1 %1272  ;;  %2120 = vmatmul.mubr.msk.f32.vlgmr.msra.gmra.mxu1 %vm311_vm5, %v1170_v51 }
 0x281   : > { %1442 = vmatprep.mubr.f32.mxu1 %v2270_v1 }
 0x284   : > { %v1461_v59 = vpop.permute.xlu0 %1460  ;;  %v1368_v60 = vpop.permute.xlu1 %1367 }
 0x288   : > { %v1366_v0 = vpop.permute.xlu0 %1365  ;;  %v1457_v2 = vpop.permute.xlu1 %1456 }
 0x289   : > { %v1369_v3 = vsel %vm520_vm6, %v1364_v54, %v1366_v0  ;;  %v1370_v4 = vsel %vm520_vm6, %v1366_v0, %v1368_v60 }
 0x28a   : > { %2124 = vmatprep.subr.msk.mxu1 %vm315_vm4, %v1370_v4 }
 0x28b   : > { %2125 = vmatpush1.msk.msra.mxu1 %vm315_vm4, %v1369_v3 }
 0x28c   : > { %v1898_v8 = vpop.permute.xlu0 %1897  ;;  %2126 = vmatmul.mubr.msk.f32.vlgmr.msra.gmra.mxu1 %vm311_vm5, %v1171_v5  ;;  %2130 = vmatprep.subr.msk.mxu1 %vm315_vm4, %v2539_v30  ;;  %v1275_v17 = vpop.permute.xlu1 %1274  ;;  %v1174_v30 = vld [vmem:[%s2707_s3 + $0x14] sm:$0xf] }
 0x28d   : > { %v1278_v9 = vsel %vm400_vm7, %v1273_v55, %v1275_v17  ;;  %v1279_v10 = vsel %vm400_vm7, %v1275_v17, %v1277_v47  ;;  %2131 = vmatpush1.msk.msra.mxu1 %vm315_vm4, %v2552_v35  ;;  %1615 = vmatprep.mubr.f32.mxu1 %v2270_v1  ;;  %v1901_v27 = vrot.slane %v1898_v8, 4  ;;  %v1999_v8 = vcombine.high %v2378_v12, %v2378_v12 }
 0x28e   : > { %2121 = vmatprep.subr.msk.mxu0 %vm315_vm4, %v1279_v10  ;;  %2136 = vmatprep.subr.msk.mxu1 %vm315_vm4, %v1727_v7 }
 0x28f   : > { %2122 = vmatpush1.msk.msra.mxu0 %vm315_vm4, %v1278_v9 }
 0x290   : > { %2123 = vmatmul.mubr.msk.f32.vlgmr.msra.gmra.mxu0 %vm311_vm5, %v1169_v11  ;;  %2132 = vmatmul.mubr.msk.f32.vlgmr.msra.gmra.mxu1 %vm311_vm5, %v1173_v13  ;;  %v1459_v15 = vpop.permute.xlu1 %1458  ;;  %v1812_v16 = vpop.permute.xlu0 %1811 }
 0x291   : > { %2137 = vmatpush1.msk.msra.mxu1 %vm315_vm4, %v1725_v63  ;;  %v1462_v19 = vsel %vm621_vm8, %v1457_v2, %v1459_v15  ;;  %v1463_v20 = vsel %vm621_vm8, %v1459_v15, %v1461_v59  ;;  %1535 = vmatprep.mubr.f32.mxu0 %v2270_v1 }
 0x292   : > { %2127 = vmatprep.subr.msk.mxu0 %vm315_vm4, %v1463_v20  ;;  %1799 = vmatprep.mubr.f32.mxu1 %v2270_v1 }
 0x293   : > { %2128 = vmatpush1.msk.msra.mxu0 %vm315_vm4, %v1462_v19 }
 0x294   : > { %2129 = vmatmul.mubr.msk.f32.vlgmr.msra.gmra.mxu0 %vm311_vm5, %v1172_v21  ;;  %2133 = vmatprep.subr.msk.mxu0 %vm315_vm4, %v1635_v22  ;;  %v1900_v26 = vpop.permute.xlu1 %1899  ;;  %v1810_v31 = vpop.permute.xlu0 %1809 }
 0x295   : > { %v1902_v28 = vrot.slane %v1900_v26, 4  ;;  %2134 = vmatpush1.msk.msra.mxu0 %vm315_vm4, %v1633_v14  ;;  %1707 = vmatprep.mubr.f32.mxu0 %v2270_v1  ;;  %v1815_v40 = vsel %vm977_vm9, %v1810_v31, %v1812_v16 }
 0x296   : > { %2138 = vmatmul.mubr.msk.f32.vlgmr.msra.gmra.mxu1 %vm311_vm5, %v1175_v23 }
 0x297   : > { %v1903_v34 = vsel %vm315_vm4, %v1901_v27, %v1902_v28  ;;  %1980 = vmatprep.mubr.f32.mxu1 %v2270_v1 }
 0x298   : > { %v1904_v35 = vsel %vm293_vm0, %v1903_v34, %v1900_v26  ;;  %2135 = vmatmul.mubr.msk.f32.vlgmr.msra.gmra.mxu0 %vm311_vm5, %v1174_v30  ;;  %v1814_v36 = vpop.permute.xlu1 %1813 }
 0x299   : > { %v1906_v38 = vmul.f32 %v1904_v35, %v2387_v18  ;;  %v1816_v39 = vsel %vm977_vm9, %v1812_v16, %v1814_v36  ;;  %1888 = vmatprep.mubr.f32.mxu0 %v2270_v1  ;;  %v1177_v18 = vld [vmem:[%s2707_s3 + $0x20] sm:$0xf] }
 0x29a   : > { %2139 = vmatprep.subr.msk.mxu0 %vm315_vm4, %v1816_v39 }
 0x29b   : > { %v1908_v41 = vcombine.high %v1906_v38, %v1906_v38  ;;  %2140 = vmatpush1.msk.msra.mxu0 %vm315_vm4, %v1815_v40 }
 0x29c   : > { %2141 = vmatmul.mubr.msk.f32.vlgmr.msra.gmra.mxu0 %vm311_vm5, %v1176_v24 }
 0x29d   : > { %2142 = vmatprep.subr.msk.mxu1 %vm315_vm4, %v1908_v41 }
 0x29e   : > { %2143 = vmatpush1.msk.msra.mxu1 %vm315_vm4, %v1906_v38 }
 0x29f   : > { %2144 = vmatmul.mubr.msk.f32.vlgmr.msra.gmra.mxu1 %vm311_vm5, %v1177_v18 }
 0x2a5   : > { %v1993_v4 = vpop.permute.xlu1 %1992 }
 0x340   : > { %v1264_v1 = vpop.f32.mrf.mxu1 }
 0x342   : > { %v1266_v32 = vpop.f32.mrf.mxu1 }
 0x34c   : > { %v1444_v25 = vpop.f32.mrf.mxu1 }
 0x34e   : > { %v1446_v29 = vpop.f32.mrf.mxu1 }
 0x350   : > { %v1353_v33 = vpop.f32.mrf.mxu0  ;;  %v1617_v37 = vpop.f32.mrf.mxu1 }
 0x351   : > { %v1354_v42 = vadd.f32 %v1353_v33, %v1264_v1 }
 0x352   : > { %v1355_v43 = vpop.f32.mrf.mxu0  ;;  %v1619_v44 = vpop.f32.mrf.mxu1 }
 0x353   : > { %v1356_v45 = vadd.f32 %v1355_v43, %v1266_v32  ;;  %v1449_v46 = vadd.f32 %v1444_v25, %v1354_v42 }
 0x354   : > { %v1537_v47 = vpop.f32.mrf.mxu0 }
 0x355   : > { %v1450_v48 = vadd.f32 %v1446_v29, %v1356_v45  ;;  %v1542_v49 = vadd.f32 %v1537_v47, %v1449_v46 }
 0x356   : > { %v1539_v50 = vpop.f32.mrf.mxu0  ;;  %v1801_v51 = vpop.f32.mrf.mxu1 }
 0x357   : > { %v1543_v52 = vadd.f32 %v1539_v50, %v1450_v48  ;;  %v1622_v53 = vadd.f32 %v1617_v37, %v1542_v49 }
 0x358   : > { %v1709_v54 = vpop.f32.mrf.mxu0  ;;  %v1803_v58 = vpop.f32.mrf.mxu1 }
 0x359   : > { %v1623_v55 = vadd.f32 %v1619_v44, %v1543_v52  ;;  %v1714_v56 = vadd.f32 %v1709_v54, %v1622_v53 }
 0x35a   : > { %v1711_v57 = vpop.f32.mrf.mxu0 }
 0x35b   : > { %v1715_v59 = vadd.f32 %v1711_v57, %v1623_v55  ;;  %v1806_v60 = vadd.f32 %v1801_v51, %v1714_v56 }
 0x35c   : > { %v1890_v61 = vpop.f32.mrf.mxu0 }
 0x35d   : > { %v1807_v62 = vadd.f32 %v1803_v58, %v1715_v59  ;;  %v1895_v63 = vadd.f32 %v1890_v61, %v1806_v60 }
 0x35e   : > { %v1892_v0 = vpop.f32.mrf.mxu0 }
 0x35f   : > { %v1896_v2 = vadd.f32 %v1892_v0, %v1807_v62  ;;  %v1982_v3 = vpop.f32.mrf.mxu1 }
 0x360   : > { %v1987_v5 = vadd.f32 %v1982_v3, %v1895_v63 }
 0x361   : > { %v1984_v6 = vpop.f32.mrf.mxu1 }
 0x362   : > { %v1988_v7 = vadd.f32 %v1984_v6, %v1896_v2  ;;  %v1995_v17 = vadd.f32 %v1993_v4, %v1987_v5 }
 0x364   : > { %v1996_v9 = vadd.f32 %v1993_v4, %v1988_v7  ;;  %v2001_v10 = vadd.f32 %v1995_v17, %v2378_v12 }
 0x366   : > { %v2002_v11 = vadd.f32 %v1999_v8, %v1996_v9  ;;  %v2003_v13 = vmax.f32 %v2001_v10, 0.0 }
 0x368   : > { %v2004_v14 = vmax.f32 %v2002_v11, 0.0 }
 0x36a   : > { %v2007_v15 = vcombine.low %v2003_v13, %v2004_v14 }
 0x36c   : > { %2009 = vst [vmem:[%s244_s15] sm:$0xff] %v2007_v15 }
 0x36d   : > { %2221 = shalt.err (!%p2218_p3)
}
 0x36e   : > { %s2222_s16 = scalar_lea.hbm %s2023_s12, 128  ;;  %s2226_s26 = scalar_lea.hbm %s2710_s6, 256 }
 0x36f   : > { %p2223_p4 = scmp.ne.s32.totalorder %s2023_s12, %s2222_s16  ;;  %p2227_p9 = scmp.lt.s32.totalorder %s2023_s12, %s2710_s6 }
 0x370   : > { %p2228_p10 = scmp.lt.s32.totalorder %s2226_s26, %s2222_s16 }
 0x371   : > { %p2224_p7 = pnand %p2223_p4, %p2354_p5 }
 0x372   : > { %p2229_p11 = por %p2228_p10, %p2227_p9 }
 0x373   : > { %p2225_p8 = pneg %p2224_p7 }
 0x375   : > { %p2230_p12 = pnand %p2229_p11, %p2225_p8 }
 0x377   : > { %2233 = shalt.err (!%p2230_p12)
}
 0x378   : > { %2152 = dma.vmem_to_hbm [thread:$0]  (%p2354_p5), %s2026_s29, 128, %s2023_s12, %s2011_s13  }
 0x379 PF: > { %p2158_p13 = scmp.ge.s32.totalorder %s2268_s24, 2  ;;  %s2037_s15 = sand.u32 1, %s2256_s21  }
 0x37a   : > { %s2038_s9 = scalar_lea.sflag [#allocation5], %s2037_s15 }
 0x37b   : > { %p2155_p0 = pnand %p2158_p13, %p2358_p6 }
 0x37d   : > { %p2156_p1 = pneg %p2155_p0 }
 0x37f   : > { %2251 = dma.done.wait (%p2156_p1), %s2038_s9, 128  }
 0x380   : > { %2253 = vsyncadd (%p2156_p1), %s2038_s9, 4294967168  ;;  %p16_p2 = scmp.ge.s32.totalorder %s2341_s27, 4   ;;  %s2713_s21 = smov %s2260_s22 }
 0x381   : > { %s2714_s22 = smov %s2264_s23  ;;  %s2715_s23 = smov %s2352_s30 }
 0x382   : > { %s2716_s24 = smov %s2341_s27  ;;  %18 = sbr.rel (!%p16_p2) target bundleno = 3 (0x3), region = 79 }
 0x387   :  { %2043 = vsyncpa [#allocation5], 1 }
 0x388   :  { %2045 = vsyncpa [#allocation5 + $0x1], 1 }

</bundles_post_ra>
